<compile_context>
chip_gen: v7x
topology: tpu7x:2x2x1
jax: 0.10.0
libtpu: 0.0.40
codegen_flags: <defaults>
</compile_context>

<pallas_src>
import jax
import jax.numpy as jnp
from jax import lax
from jax.experimental import pallas as pl
from jax.experimental.pallas import tpu as pltpu  # noqa: F401  (no grid/pipeline needed at these shapes)

EPS = 1e-10  # plain Python float: literals don't become captured constants


def _self_attn_kernel(x_ref, go_ref, po_ref, gp_ref, w_ref, b_ref, out_ref):
    # x_ref  : (B*L, D)  all batch rows, flattened (free bitcast reshape)
    # go_ref : (B, L, 3) gold opinion logits
    # po_ref : (B, L, 5) predicted opinion probs
    # gp_ref : (B, L)    gold-opinion probability
    # w_ref  : (D, D)    shared weight
    # b_ref  : (1, D)    shared bias
    # out_ref: (B*L, D)
    B, L, _ = go_ref.shape

    x_all = x_ref[...]                 # [B*L, D]
    W = w_ref[...]                     # [D, D]
    b = b_ref[...]                     # [1, D]

    # Batched projection: one MXU matmul for all batch elements.
    x_tran = jnp.dot(x_all, W, preferred_element_type=jnp.float32) + b   # [B*L, D]

    # Batch-invariant location weights / off-diagonal mask, built from iota.
    row = lax.broadcasted_iota(jnp.int32, (L, L), 0)
    col = lax.broadcasted_iota(jnp.int32, (L, L), 1)
    dist = jnp.abs(row - col).astype(jnp.float32)                        # [L, L]
    offdiag = (row != col).astype(jnp.float32)                           # [L, L]
    loc_w = offdiag / (dist + EPS)                                       # diag -> 0

    # Channel selectors (every row identical) built from iota: contracting
    # them against the (L, 3)/(L, 5) opinion blocks on the MXU produces the
    # per-column opinion weights directly in lane orientation — no
    # lane<->sublane relayout needed.
    sel3 = (lax.broadcasted_iota(jnp.int32, (L, 3), 1) >= 1).astype(jnp.float32)  # rows = [0,1,1]
    sel5 = (lax.broadcasted_iota(jnp.int32, (L, 5), 1) >= 3).astype(jnp.float32)  # rows = [0,0,0,1,1]

    go = go_ref[...]                   # [B, L, 3]
    po = po_ref[...]                   # [B, L, 5]
    gp = gp_ref[...]                   # [B, L]

    for bi in range(B):                # statically unrolled, B = 2
        x_b = x_all[bi * L:(bi + 1) * L, :]        # [L, D]
        xt_b = x_tran[bi * L:(bi + 1) * L, :]      # [L, D]

        # scores = x_tran @ x^T, transpose folded into dot_general
        scores = lax.dot_general(
            xt_b, x_b,
            dimension_numbers=(((1,), (1,)), ((), ())),
            preferred_element_type=jnp.float32)                          # [L, L]

        # opinion weights: opw[j] = gp_j*(go_j1+go_j2) + (1-gp_j)*(po_j3+po_j4)
        # gold_mat/pred_mat have identical rows = the per-column sums.
        gold_mat = lax.dot_general(
            sel3, go[bi], dimension_numbers=(((1,), (1,)), ((), ())),
            preferred_element_type=jnp.float32)                          # [L, L]
        pred_mat = lax.dot_general(
            sel5, po[bi], dimension_numbers=(((1,), (1,)), ((), ())),
            preferred_element_type=jnp.float32)                          # [L, L]
        gp_row = gp[bi:bi + 1, :]                                        # [1, L]
        opw_mat = gp_row * gold_mat + (1.0 - gp_row) * pred_mat          # [L, L]

        w = scores * loc_w             # location weighting (diag already 0)
        w = w * opw_mat                # opinion weighting, broadcast over rows
        w = jnp.exp(jnp.tanh(w))
        w = w * offdiag                # zero the diagonal
        denom = jnp.sum(w, axis=-1, keepdims=True)                       # [L, 1]
        # exact divide; epsilon added AFTER the divide (matches torch exactly)
        w = w / denom + EPS

        out_ref[pl.ds(bi * L, L), :] = jnp.dot(
            w, x_b, preferred_element_type=jnp.float32)


def self_attention_pallas(x, gold_opinion, predict_opinion, gold_prob, W, b):
    """
    x              : [B, L, D]  f32
    gold_opinion   : [B, L, 3]  f32
    predict_opinion: [B, L, 5]  f32
    gold_prob      : [B, L]     f32
    W              : [D, D]     f32
    b              : [D]        f32
    returns        : [B, L, D]  f32
    """
    B, L, D = x.shape

    # Layout-preserving (bitcast) reshapes only — no wrapper compute fusion.
    x_flat = x.reshape(B * L, D)
    b2 = b.reshape(1, D)

    out_flat = pl.pallas_call(
        _self_attn_kernel,
        out_shape=jax.ShapeDtypeStruct((B * L, D), jnp.float32),
        # No grid / BlockSpecs: single invocation, whole arrays resident in
        # VMEM (total footprint << VMEM on every TPU generation).
    )(x_flat, gold_opinion, predict_opinion, gold_prob, W, b2)

    return out_flat.reshape(B, L, D)


def self_attention_ref(x, gold_opinion, predict_opinion, gold_prob, W, b):
    """Pure-JAX reference mirroring the PyTorch forward (use_opinion=True, mask=None)."""
    B, L, D = x.shape
    eps = jnp.float32(1e-10)
    x_tran = jnp.einsum("bld,de->ble", x, W) + b
    weights = jnp.einsum("ble,bme->blm", x_tran, x)
    idx = jnp.arange(L, dtype=jnp.float32)
    location = jnp.abs(idx[None, :] - idx[:, None])
    loc_w = (1.0 / (location + eps)) * (location != 0.0).astype(jnp.float32)
    weights = weights * loc_w[None]
    gold_ = gold_opinion[:, :, 1] + gold_opinion[:, :, 2]
    pred_ = predict_opinion[:, :, 3] + predict_opinion[:, :, 4]
    opw = gold_prob * gold_ + (1.0 - gold_prob) * pred_
    weights = weights * opw[:, None, :]
    weights = jnp.exp(jnp.tanh(weights))
    weights = weights * (jnp.eye(L) == 0).astype(jnp.float32)[None]
    weights = weights / jnp.sum(weights, axis=-1, keepdims=True) + eps
    return jnp.einsum("blm,bmd->bld", weights, x)


if __name__ == "__main__":
    # config: cnn_dim=32, batch_size=2, overall_maxlen=8, use_opinion=True, bias=True
    B, L, D = 2, 8, 32

    key = jax.random.PRNGKey(0)
    k_x, k_go, k_po, k_gp, k_w = jax.random.split(key, 5)

    x = jax.random.normal(k_x, (B, L, D), dtype=jnp.float32)
    gold_opinion = jax.random.uniform(k_go, (B, L, 3), dtype=jnp.float32)
    predict_opinion = jax.random.uniform(k_po, (B, L, 5), dtype=jnp.float32)
    gold_prob = jax.random.uniform(k_gp, (B, L), dtype=jnp.float32)

    # Parameters (deterministic): W ~ xavier_normal([D, D]), b = zeros([D])
    xavier_std = (2.0 / (D + D)) ** 0.5
    W = jax.random.normal(k_w, (D, D), dtype=jnp.float32) * xavier_std
    b = jnp.zeros((D,), dtype=jnp.float32)

    out = self_attention_pallas(x, gold_opinion, predict_opinion, gold_prob, W, b)
    out = jax.block_until_ready(out)

    ref = self_attention_ref(x, gold_opinion, predict_opinion, gold_prob, W, b)
    assert out.shape == (B, L, D)
    # Tolerance covers the difference between XLA's default-precision einsum
    # (reference) and Mosaic's MXU lowering of the in-kernel dots; the kernel
    # itself now uses an exact divide for the normalization.
    assert jnp.allclose(out, ref, rtol=1e-2, atol=1e-2), "mismatch vs JAX reference"

    print("KERNEL_OK")
</pallas_src>

<mosaic_0001>
module attributes {stable_mosaic.version = 11 : i64} {
  func.func @_self_attn_kernel(%arg0: memref<16x32xf32, #tpu.memory_space<vmem>>, %arg1: memref<2x8x3xf32, #tpu.memory_space<vmem>>, %arg2: memref<2x8x5xf32, #tpu.memory_space<vmem>>, %arg3: memref<2x8xf32, #tpu.memory_space<vmem>>, %arg4: memref<32x32xf32, #tpu.memory_space<vmem>>, %arg5: memref<1x32xf32, #tpu.memory_space<vmem>>, %arg6: memref<16x32xf32, #tpu.memory_space<vmem>>) attributes {dimension_semantics = [], scalar_prefetch = 0 : i64, scratch_operands = 0 : i64, tpu.core_type = #tpu.core_type<tc>} {
    %c0 = arith.constant 0 : index
    %c0_0 = arith.constant 0 : index
    %0 = vector.load %arg0[%c0, %c0_0] : memref<16x32xf32, #tpu.memory_space<vmem>>, vector<16x32xf32>
    %c0_1 = arith.constant 0 : index
    %c0_2 = arith.constant 0 : index
    %1 = vector.load %arg4[%c0_1, %c0_2] : memref<32x32xf32, #tpu.memory_space<vmem>>, vector<32x32xf32>
    %c0_3 = arith.constant 0 : index
    %c0_4 = arith.constant 0 : index
    %2 = vector.load %arg5[%c0_3, %c0_4] : memref<1x32xf32, #tpu.memory_space<vmem>>, vector<1x32xf32>
    %cst = arith.constant dense<0.000000e+00> : vector<16x32xf32>
    %3 = tpu.matmul %0, %1, %cst {dimension_numbers = #tpu.dot_dimension_numbers<[1], [0], [0], [1], [0, 0, 1, 1], [], []>} : vector<16x32xf32>, vector<32x32xf32>, vector<16x32xf32> -> vector<16x32xf32>
    %4 = vector.broadcast %2 : vector<1x32xf32> to vector<16x32xf32>
    %5 = arith.addf %3, %4 : vector<16x32xf32>
    %6 = tpu.iota {dimensions = array<i32: 0>} : vector<8x8xi32>
    %7 = tpu.iota {dimensions = array<i32: 1>} : vector<8x8xi32>
    %8 = arith.subi %6, %7 : vector<8x8xi32>
    %9 = math.absi %8 : vector<8x8xi32>
    %10 = arith.sitofp %9 : vector<8x8xi32> to vector<8x8xf32>
    %11 = arith.cmpi ne, %6, %7 : vector<8x8xi32>
    %12 = arith.extui %11 : vector<8x8xi1> to vector<8x8xi32>
    %13 = arith.sitofp %12 : vector<8x8xi32> to vector<8x8xf32>
    %cst_5 = arith.constant 1.000000e-10 : f32
    %14 = vector.broadcast %cst_5 : f32 to vector<8x8xf32>
    %15 = arith.addf %10, %14 : vector<8x8xf32>
    %16 = arith.divf %13, %15 : vector<8x8xf32>
    %17 = tpu.iota {dimensions = array<i32: 1>} : vector<8x3xi32>
    %c1_i32 = arith.constant 1 : i32
    %18 = vector.broadcast %c1_i32 : i32 to vector<8x3xi32>
    %19 = arith.cmpi sge, %17, %18 : vector<8x3xi32>
    %20 = arith.extui %19 : vector<8x3xi1> to vector<8x3xi32>
    %21 = arith.sitofp %20 : vector<8x3xi32> to vector<8x3xf32>
    %22 = tpu.iota {dimensions = array<i32: 1>} : vector<8x5xi32>
    %c3_i32 = arith.constant 3 : i32
    %23 = vector.broadcast %c3_i32 : i32 to vector<8x5xi32>
    %24 = arith.cmpi sge, %22, %23 : vector<8x5xi32>
    %25 = arith.extui %24 : vector<8x5xi1> to vector<8x5xi32>
    %26 = arith.sitofp %25 : vector<8x5xi32> to vector<8x5xf32>
    %c0_6 = arith.constant 0 : index
    %c0_7 = arith.constant 0 : index
    %c0_8 = arith.constant 0 : index
    %27 = vector.load %arg1[%c0_6, %c0_7, %c0_8] : memref<2x8x3xf32, #tpu.memory_space<vmem>>, vector<2x8x3xf32>
    %c0_9 = arith.constant 0 : index
    %c0_10 = arith.constant 0 : index
    %c0_11 = arith.constant 0 : index
    %28 = vector.load %arg2[%c0_9, %c0_10, %c0_11] : memref<2x8x5xf32, #tpu.memory_space<vmem>>, vector<2x8x5xf32>
    %c0_12 = arith.constant 0 : index
    %c0_13 = arith.constant 0 : index
    %29 = vector.load %arg3[%c0_12, %c0_13] : memref<2x8xf32, #tpu.memory_space<vmem>>, vector<2x8xf32>
    %30 = vector.extract_strided_slice %0 {offsets = [0, 0], sizes = [8, 32], strides = [1, 1]} : vector<16x32xf32> to vector<8x32xf32>
    %31 = vector.extract_strided_slice %5 {offsets = [0, 0], sizes = [8, 32], strides = [1, 1]} : vector<16x32xf32> to vector<8x32xf32>
    %cst_14 = arith.constant dense<0.000000e+00> : vector<8x8xf32>
    %32 = tpu.matmul %31, %30, %cst_14 {dimension_numbers = #tpu.dot_dimension_numbers<[1], [1], [0], [0], [0, 0, 1, 0], [], []>} : vector<8x32xf32>, vector<8x32xf32>, vector<8x8xf32> -> vector<8x8xf32>
    %33 = vector.extract_strided_slice %27 {offsets = [0, 0, 0], sizes = [1, 8, 3], strides = [1, 1, 1]} : vector<2x8x3xf32> to vector<1x8x3xf32>
    %34 = vector.shape_cast %33 : vector<1x8x3xf32> to vector<8x3xf32>
    %cst_15 = arith.constant dense<0.000000e+00> : vector<8x8xf32>
    %35 = tpu.matmul %21, %34, %cst_15 {dimension_numbers = #tpu.dot_dimension_numbers<[1], [1], [0], [0], [0, 0, 1, 0], [], []>} : vector<8x3xf32>, vector<8x3xf32>, vector<8x8xf32> -> vector<8x8xf32>
    %36 = vector.extract_strided_slice %28 {offsets = [0, 0, 0], sizes = [1, 8, 5], strides = [1, 1, 1]} : vector<2x8x5xf32> to vector<1x8x5xf32>
    %37 = vector.shape_cast %36 : vector<1x8x5xf32> to vector<8x5xf32>
    %cst_16 = arith.constant dense<0.000000e+00> : vector<8x8xf32>
    %38 = tpu.matmul %26, %37, %cst_16 {dimension_numbers = #tpu.dot_dimension_numbers<[1], [1], [0], [0], [0, 0, 1, 0], [], []>} : vector<8x5xf32>, vector<8x5xf32>, vector<8x8xf32> -> vector<8x8xf32>
    %39 = vector.extract_strided_slice %29 {offsets = [0, 0], sizes = [1, 8], strides = [1, 1]} : vector<2x8xf32> to vector<1x8xf32>
    %40 = vector.broadcast %39 : vector<1x8xf32> to vector<8x8xf32>
    %41 = arith.mulf %40, %35 : vector<8x8xf32>
    %cst_17 = arith.constant 1.000000e+00 : f32
    %42 = vector.broadcast %cst_17 : f32 to vector<1x8xf32>
    %43 = arith.subf %42, %39 : vector<1x8xf32>
    %44 = vector.broadcast %43 : vector<1x8xf32> to vector<8x8xf32>
    %45 = arith.mulf %44, %38 : vector<8x8xf32>
    %46 = arith.addf %41, %45 : vector<8x8xf32>
    %47 = arith.mulf %32, %16 : vector<8x8xf32>
    %48 = arith.mulf %47, %46 : vector<8x8xf32>
    %49 = math.tanh %48 : vector<8x8xf32>
    %50 = math.exp %49 : vector<8x8xf32>
    %51 = arith.mulf %50, %13 : vector<8x8xf32>
    %cst_18 = arith.constant dense<0.000000e+00> : vector<8xf32>
    %52 = vector.multi_reduction <add>, %51, %cst_18 [1] : vector<8x8xf32> to vector<8xf32>
    %53 = vector.shape_cast %52 : vector<8xf32> to vector<8x1xf32>
    %54 = vector.broadcast %53 : vector<8x1xf32> to vector<8x8xf32>
    %55 = arith.divf %51, %54 : vector<8x8xf32>
    %cst_19 = arith.constant 1.000000e-10 : f32
    %56 = vector.broadcast %cst_19 : f32 to vector<8x8xf32>
    %57 = arith.addf %55, %56 : vector<8x8xf32>
    %cst_20 = arith.constant dense<0.000000e+00> : vector<8x32xf32>
    %58 = tpu.matmul %57, %30, %cst_20 {dimension_numbers = #tpu.dot_dimension_numbers<[1], [0], [0], [1], [0, 0, 1, 1], [], []>} : vector<8x8xf32>, vector<8x32xf32>, vector<8x32xf32> -> vector<8x32xf32>
    %c0_21 = arith.constant 0 : index
    %c0_22 = arith.constant 0 : index
    %59 = vector.load %arg6[%c0_21, %c0_22] : memref<16x32xf32, #tpu.memory_space<vmem>>, vector<8x32xf32>
    tpu.vector_store %arg6[%c0_21, %c0_22], %58 {strides = array<i32>} : memref<16x32xf32, #tpu.memory_space<vmem>>, vector<8x32xf32>,
    %60 = vector.extract_strided_slice %0 {offsets = [8, 0], sizes = [8, 32], strides = [1, 1]} : vector<16x32xf32> to vector<8x32xf32>
    %61 = vector.extract_strided_slice %5 {offsets = [8, 0], sizes = [8, 32], strides = [1, 1]} : vector<16x32xf32> to vector<8x32xf32>
    %cst_23 = arith.constant dense<0.000000e+00> : vector<8x8xf32>
    %62 = tpu.matmul %61, %60, %cst_23 {dimension_numbers = #tpu.dot_dimension_numbers<[1], [1], [0], [0], [0, 0, 1, 0], [], []>} : vector<8x32xf32>, vector<8x32xf32>, vector<8x8xf32> -> vector<8x8xf32>
    %63 = vector.extract_strided_slice %27 {offsets = [1, 0, 0], sizes = [1, 8, 3], strides = [1, 1, 1]} : vector<2x8x3xf32> to vector<1x8x3xf32>
    %64 = vector.shape_cast %63 : vector<1x8x3xf32> to vector<8x3xf32>
    %cst_24 = arith.constant dense<0.000000e+00> : vector<8x8xf32>
    %65 = tpu.matmul %21, %64, %cst_24 {dimension_numbers = #tpu.dot_dimension_numbers<[1], [1], [0], [0], [0, 0, 1, 0], [], []>} : vector<8x3xf32>, vector<8x3xf32>, vector<8x8xf32> -> vector<8x8xf32>
    %66 = vector.extract_strided_slice %28 {offsets = [1, 0, 0], sizes = [1, 8, 5], strides = [1, 1, 1]} : vector<2x8x5xf32> to vector<1x8x5xf32>
    %67 = vector.shape_cast %66 : vector<1x8x5xf32> to vector<8x5xf32>
    %cst_25 = arith.constant dense<0.000000e+00> : vector<8x8xf32>
    %68 = tpu.matmul %26, %67, %cst_25 {dimension_numbers = #tpu.dot_dimension_numbers<[1], [1], [0], [0], [0, 0, 1, 0], [], []>} : vector<8x5xf32>, vector<8x5xf32>, vector<8x8xf32> -> vector<8x8xf32>
    %69 = vector.extract_strided_slice %29 {offsets = [1, 0], sizes = [1, 8], strides = [1, 1]} : vector<2x8xf32> to vector<1x8xf32>
    %70 = vector.broadcast %69 : vector<1x8xf32> to vector<8x8xf32>
    %71 = arith.mulf %70, %65 : vector<8x8xf32>
    %cst_26 = arith.constant 1.000000e+00 : f32
    %72 = vector.broadcast %cst_26 : f32 to vector<1x8xf32>
    %73 = arith.subf %72, %69 : vector<1x8xf32>
    %74 = vector.broadcast %73 : vector<1x8xf32> to vector<8x8xf32>
    %75 = arith.mulf %74, %68 : vector<8x8xf32>
    %76 = arith.addf %71, %75 : vector<8x8xf32>
    %77 = arith.mulf %62, %16 : vector<8x8xf32>
    %78 = arith.mulf %77, %76 : vector<8x8xf32>
    %79 = math.tanh %78 : vector<8x8xf32>
    %80 = math.exp %79 : vector<8x8xf32>
    %81 = arith.mulf %80, %13 : vector<8x8xf32>
    %cst_27 = arith.constant dense<0.000000e+00> : vector<8xf32>
    %82 = vector.multi_reduction <add>, %81, %cst_27 [1] : vector<8x8xf32> to vector<8xf32>
    %83 = vector.shape_cast %82 : vector<8xf32> to vector<8x1xf32>
    %84 = vector.broadcast %83 : vector<8x1xf32> to vector<8x8xf32>
    %85 = arith.divf %81, %84 : vector<8x8xf32>
    %cst_28 = arith.constant 1.000000e-10 : f32
    %86 = vector.broadcast %cst_28 : f32 to vector<8x8xf32>
    %87 = arith.addf %85, %86 : vector<8x8xf32>
    %cst_29 = arith.constant dense<0.000000e+00> : vector<8x32xf32>
    %88 = tpu.matmul %87, %60, %cst_29 {dimension_numbers = #tpu.dot_dimension_numbers<[1], [0], [0], [1], [0, 0, 1, 1], [], []>} : vector<8x8xf32>, vector<8x32xf32>, vector<8x32xf32> -> vector<8x32xf32>
    %c8 = arith.constant 8 : index
    %c0_30 = arith.constant 0 : index
    %89 = vector.load %arg6[%c8, %c0_30] : memref<16x32xf32, #tpu.memory_space<vmem>>, vector<8x32xf32>
    tpu.vector_store %arg6[%c8, %c0_30], %88 {strides = array<i32>} : memref<16x32xf32, #tpu.memory_space<vmem>>, vector<8x32xf32>,
    return
  }
}

</mosaic_0001>

<bundles_post_ra>
// kernel: tpu_custom_call.1
= control target key start
LH: loop header
LB: loop body
LE: loop exit
PB: predicated region body
PF: predicated region fallthrough
CT: control target
= control target key end

     0   :  { %vm37_vm0 = vcmask 261120   ;;  %v948_v6 = vmov 0.0   ;;  %s1092_s0 = inlined_call_operand.vmem [shape: f32[16,32], index: 0, kind: input, shape index: {}]   ;;  %s1093_s1 = inlined_call_operand.vmem [shape: f32[2,8,3], index: 1, kind: input, shape index: {}]   ;;  %s1094_s2 = inlined_call_operand.vmem [shape: f32[2,8,5], index: 2, kind: input, shape index: {}]   ;;  %s1095_s3 = inlined_call_operand.vmem [shape: f32[2,8], index: 3, kind: input, shape index: {}]   ;;  %s1096_s4 = inlined_call_operand.vmem [shape: f32[32,32], index: 4, kind: input, shape index: {}]   ;;  %s1097_s5 = inlined_call_operand.vmem [shape: f32[1,32], index: 5, kind: input, shape index: {}]   ;;  %s1098_s6 = inlined_call_operand.hbm [shape: f32[16,32], index: 6, kind: output, shape index: {}]  }
   0x1   :  { %v26_v0 = vld [vmem:[%s1096_s4] sm:$0xff]  ;;  %v27_v1 = vld [vmem:[%s1096_s4 + $0x8] sm:$0xff]  ;;  %v28_v2 = vld [vmem:[%s1096_s4 + $0x10] sm:$0xff]  ;;  %857 = vmatprep.subr.mxu1 %v948_v6 }
   0x2   :  { %v897_v3 = vpack.c.bf16 %v27_v1, %v26_v0  ;;  %v29_v4 = vld [vmem:[%s1096_s4 + $0x18] sm:$0xff]  ;;  %v24_v5 = vld [vmem:[%s1092_s0] sm:$0xff] }
   0x3   :  { %v901_v7 = vpack.c.bf16 %v29_v4, %v28_v2  ;;  %854 = vmatprep.mubr.msk.f32.mxu0 %vm37_vm0, %v24_v5  ;;  %858 = vmatpush3.xpose.msk.msra.mxu1 %vm37_vm0, %v24_v5 }
   0x4   :  { %11 = vsyncpa [#allocation3], 0  ;;  %898 = vmatprep.subr.bf16.mxu0 %v897_v3  ;;  %vm949_vm1 = vmmov 0   ;;  %862 = vmatprep.subr.mxu1 %v948_v6  ;;  %v119_v8 = vlaneseq  ;;  %v1012_v9 = vld [vmem:[%s1092_s0 + $0x8] sm:$0xff]  ;;  %v142_v11 = vld [vmem:[%s1094_s2] sm:$0xff]  ;;  %vm295_vm2 = vcmask 39936  }
   0x5   :  { %859 = vmatprep.mubr.msk.f32.mxu1 %vm949_vm1, %v948_v6  ;;  %900 = vmatpush3.bf16.msra.mxu0 %v897_v3  ;;  %v803_v13 = vld [vmem:[%s1097_s5] ss:$0 sm:$0xff]  ;;  %vm218_vm4 = vcmask 23552   ;;  %vm390_vm7 = vcmask 64512   ;;  %v143_v53 = vld [vmem:[%s1094_s2 + $0x8] sm:$0xff] }
   0x6   :  { %902 = vmatprep.subr.bf16.mxu0 %v901_v7  ;;  %v122_v10 = vand.u32 127, %v119_v8  ;;  %v140_v18 = vld [vmem:[%s1093_s1] sm:$0xff]  ;;  %v120_v22 = vshrl.u32 %v119_v8, 7  ;;  %v141_v58 = vld [vmem:[%s1093_s1 + $0x8] sm:$0xff]  ;;  %s950_s1 = smov [#allocation2]  }
   0x7   :  { %v144_v28 = vld [vmem:[%s1095_s3] sm:$0x3]  ;;  %s792_s2 = sshll.u32 %s950_s1, 4  ;;  %s793_s2 = int_to_ptr.vmem [resolvable:$true] %s792_s2 }
   0x8   :  { %vm137_vm3 = vcmp.ge.s32.totalorder %v122_v10, 3  ;;  %vm134_vm5 = vcmp.ge.s32.totalorder %v122_v10, 1  ;;  %v123_v23 = vsub.s32 %v120_v22, %v122_v10  ;;  %vm128_vm6 = vcmp.ne.s32.totalorder %v120_v22, %v122_v10  ;;  %s924_s17 = scalar_lea.vmem %s793_s2, 256  ;;  %p929_p1 = scmp.lt.s32.totalorder %s793_s2, %s793_s2 }
   0x9   :  { %904 = vmatpush3.bf16.msra.mxu0 %v901_v7  ;;  %v1024_v12 = vsel %vm137_vm3, 1.0, %v948_v6  ;;  %v808_v19 = vsel %vm134_vm5, 1.0, %v948_v6  ;;  %v807_v30 = vsel %vm128_vm6, 1.0, %v948_v6  ;;  %v374_v31 = vsub.s32 0, %v120_v22  ;;  %p925_p0 = scmp.ne.s32.totalorder %s793_s2, %s924_s17  ;;  %p930_p2 = scmp.lt.s32.totalorder %s924_s17, %s924_s17 }
   0xa   :  { %867 = vmatprep.subr.mxu0 %v948_v6  ;;  %v125_v24 = vsub.s32 0, %v123_v23  ;;  %v377_v32 = vsub.f32 1.0, %v144_v28  ;;  %v692_v61 = vsub.s32 1, %v120_v22 }
   0xb   :  { %v375_v40 = vrot.slane %v144_v28, %v374_v31  ;;  %p931_p3 = por %p930_p2, %p929_p1 }
   0xc   :  { %855 = vmatmul.mubr.msk.f32.vlgmr.msra.gmra.mrb[0].mxu0 %vm37_vm0, %v1012_v9  ;;  %v806_v25 = vmin.u32 %v125_v24, %v123_v23  ;;  %v381_v34 = vrot.slane %v377_v32, %v374_v31  ;;  %v698_v62 = vrot.slane %v377_v32, %v692_v61  ;;  %v693_v1 = vrot.slane %v144_v28, %v692_v61 }
   0xd   :  { %869 = vmatprep.mubr.msk.f32.mxu0 %vm949_vm1, %v948_v6  ;;  %p932_p4 = pnand %p931_p3, %p925_p0 }
   0xe   :  { %v127_v26 = vcvt.s32.f32 %v806_v25 }
  0x10   :  { %v131_v27 = vadd.f32 1e-10, %v127_v26 }
  0x12   :  { %868 = vmatpush3.xpose.msk.msra.mxu0 %vm295_vm2, %v142_v11  ;;  %910 = vrcp.f32 %v131_v27 }
  0x13   :  { %877 = vmatprep.subr.mxu0 %v948_v6 }
  0x15   :  { %870 = vmatmul.mubr.msk.f32.vlgmr.msra.gmra.mrb[2].mxu0 %vm295_vm2, %v1024_v12 }
  0x16   :  { %878 = vmatpush3.xpose.msk.msra.mxu0 %vm37_vm0, %v1012_v9  ;;  %879 = vmatprep.mubr.msk.f32.mxu0 %vm949_vm1, %v948_v6 }
  0x17   :  { %887 = vmatprep.subr.mxu0 %v948_v6 }
  0x1c   :  { %v911_v29 = vpop.eup %910 }
  0x1d   :  { %v133_v33 = vmul.f32 %v911_v29, %v807_v30 }
  0xdf   :  { %v856_v14 = vpop.f32.mrb[0].mxu0 }
  0xe0   :  { %v116_v15 = vadd.f32 %v856_v14, %v803_v13  ;;  %v110_v16 = vpop.f32.mrb[1].mxu0 }
  0xe1   :  { %v111_v17 = vadd.f32 %v803_v13, %v110_v16 }
  0xe2   :  { %880 = vmatmul.mubr.msk.f32.vlgmr.msra.gmra.mrb[4].mxu0 %vm37_vm0, %v116_v15 }
  0xe3   :  { %860 = vmatmul.mubr.msk.f32.vlgmr.msra.gmra.mrb[0].mxu1 %vm37_vm0, %v111_v17  ;;  %889 = vmatprep.mubr.msk.f32.mxu0 %vm949_vm1, %v948_v6 }
  0xe4   :  { %863 = vmatpush3.xpose.msk.msra.mxu1 %vm218_vm4, %v140_v18  ;;  %864 = vmatprep.mubr.msk.f32.mxu1 %vm949_vm1, %v948_v6 }
  0xe5   :  { %872 = vmatprep.subr.mxu1 %v948_v6  ;;  %888 = vmatpush3.xpose.msk.msra.mxu0 %vm295_vm2, %v143_v53 }
  0xe7   :  { %865 = vmatmul.mubr.msk.f32.vlgmr.msra.gmra.mrb[2].mxu1 %vm218_vm4, %v808_v19 }
  0xe8   :  { %v368_v20 = vpop.f32.mrb[2].mxu0  ;;  %873 = vmatpush3.msra.mxu1 %v24_v5  ;;  %874 = vmatprep.mubr.msk.f32.mxu1 %vm949_vm1, %v948_v6 }
  0xe9   :  { %v871_v21 = vpop.f32.mrb[3].mxu0  ;;  %882 = vmatprep.subr.mxu1 %v948_v6  ;;  %v382_v41 = vmul.f32 %v381_v34, %v368_v20  ;;  %890 = vmatmul.mubr.msk.f32.vlgmr.msra.gmra.mrb[6].mxu0 %vm295_vm2, %v1024_v12 }
 0x1b5   :  { %v540_v35 = vpop.f32.mrb[4].mxu0 }
 0x1b6   :  { %v701_v36 = vmul.f32 %v540_v35, %v133_v33  ;;  %v214_v37 = vpop.f32.mrb[0].mxu1  ;;  %v881_v38 = vpop.f32.mrb[5].mxu0 }
 0x1b7   :  { %v861_v39 = vpop.f32.mrb[1].mxu1  ;;  %v384_v45 = vmul.f32 %v214_v37, %v133_v33 }
 0x1ba   :  { %v291_v42 = vpop.f32.mrb[2].mxu1 }
 0x1bb   :  { %v376_v43 = vmul.f32 %v375_v40, %v291_v42  ;;  %v866_v44 = vpop.f32.mrb[3].mxu1 }
 0x1bc   :  { %v686_v59 = vpop.f32.mrb[6].mxu0 }
 0x1bd   :  { %v383_v46 = vadd.f32 %v382_v41, %v376_v43  ;;  %v891_v60 = vpop.f32.mrb[7].mxu0  ;;  %v699_v2 = vmul.f32 %v698_v62, %v686_v59 }
 0x1bf   :  { %v385_v47 = vmul.f32 %v384_v45, %v383_v46 }
 0x1c1   :  { %912 = vtanh.f32 %v385_v47 }
 0x1cb   :  { %v913_v48 = vpop.eup %912 }
 0x1cc   :  { %v387_v49 = vmul.f32 1.442695, %v913_v48 }
 0x1ce   :  { %914 = vpow2.f32 %v387_v49 }
 0x1d8   :  { %v915_v50 = vpop.eup %914 }
 0x1d9   :  { %v389_v51 = vmul.f32 %v915_v50, %v807_v30 }
 0x1db   :  { %v391_v52 = vsel %vm390_vm7, %v389_v51, 0.0 }
 0x1dc   :  { %392 = vadd.xlane.f32.xlu0 %v391_v52 }
 0x269   :  { %v393_v54 = vpop.xlane.xlu0 %392 }
 0x26a   :  { %916 = vrcp.f32 %v393_v54 }
 0x274   :  { %v917_v55 = vpop.eup %916 }
 0x275   :  { %v395_v56 = vmul.f32 %v917_v55, %v389_v51 }
 0x277   :  { %v396_v57 = vadd.f32 1e-10, %v395_v56 }
 0x279   :  { %875 = vmatmul.mubr.msk.f32.vlgmr.msra.gmra.mrb[4].mxu1 %vm390_vm7, %v396_v57 }
 0x27a   :  { %883 = vmatpush3.xpose.msk.msra.mxu1 %vm218_vm4, %v141_v58  ;;  %884 = vmatprep.mubr.msk.f32.mxu1 %vm949_vm1, %v948_v6 }
 0x27b   :  { %892 = vmatprep.subr.mxu1 %v948_v6 }
 0x27d   :  { %885 = vmatmul.mubr.msk.f32.vlgmr.msra.gmra.mrb[6].mxu1 %vm218_vm4, %v808_v19 }
 0x27e   :  { %893 = vmatpush3.msra.mxu1 %v1012_v9  ;;  %894 = vmatprep.mubr.msk.f32.mxu1 %vm949_vm1, %v948_v6 }
 0x34c   :  { %v466_v63 = vpop.f32.mrb[4].mxu1 }
 0x34d   :  { %470 = vst.msk [vmem:[#allocation2] sm:$0xff] %vm37_vm0, %v466_v63  ;;  %v876_v0 = vpop.f32.mrb[5].mxu1 }
 0x350   :  { %v613_v3 = vpop.f32.mrb[6].mxu1 }
 0x351   :  { %v694_v4 = vmul.f32 %v693_v1, %v613_v3  ;;  %v886_v5 = vpop.f32.mrb[7].mxu1 }
 0x353   :  { %v700_v7 = vadd.f32 %v699_v2, %v694_v4 }
 0x355   :  { %v702_v8 = vmul.f32 %v701_v36, %v700_v7 }
 0x357   :  { %918 = vtanh.f32 %v702_v8 }
 0x361   :  { %v919_v9 = vpop.eup %918 }
 0x362   :  { %v704_v10 = vmul.f32 1.442695, %v919_v9 }
 0x364   :  { %920 = vpow2.f32 %v704_v10 }
 0x36e   :  { %v921_v6 = vpop.eup %920 }
 0x36f   :  { %v706_v11 = vmul.f32 %v921_v6, %v807_v30 }
 0x371   :  { %v707_v12 = vsel %vm390_vm7, %v706_v11, 0.0 }
 0x372   :  { %708 = vadd.xlane.f32.xlu0 %v707_v12 }
 0x3ff   :  { %v709_v13 = vpop.xlane.xlu0 %708 }
 0x400   :  { %922 = vrcp.f32 %v709_v13 }
 0x40a   :  { %v923_v14 = vpop.eup %922 }
 0x40b   :  { %v711_v15 = vmul.f32 %v923_v14, %v706_v11 }
 0x40d   :  { %v712_v16 = vadd.f32 1e-10, %v711_v15 }
 0x40f   :  { %895 = vmatmul.mubr.msk.f32.vlgmr.msra.gmra.mrb[8].mxu1 %vm390_vm7, %v712_v16 }
 0x4e2   :  { %v782_v17 = vpop.f32.mrb[8].mxu1 }
 0x4e3   :  { %786 = vst.msk [vmem:[#allocation2 + $0x8] sm:$0xff] %vm37_vm0, %v782_v17  ;;  %v896_v18 = vpop.f32.mrb[9].mxu1 }
 0x4e4   :  { %935 = shalt.err (!%p932_p4)
}
 0x4e5   :  { %s936_s20 = scalar_lea.hbm %s1098_s6, 256 }
 0x4e6   :  { %p937_p5 = scmp.ne.s32.totalorder %s1098_s6, %s936_s20  ;;  %p940_p6 = scmp.lt.u32.totalorder %s936_s20, %s1098_s6 }
 0x4e8   :  { %p942_p7 = pnand %p940_p6, %p937_p5 }
 0x4ea   :  { %945 = shalt.err (!%p942_p7)
}
 0x4eb   :  { %s951_s25 = smov 128   ;;  %s952_s26 = smov 8  }
 0x4ec   :  { %798 = dma.vmem_to_hbm [thread:$0]  %s793_s2, 256, %s1098_s6, [#allocation3], %s951_s25, %s951_s25, %s952_s26  }
 0x4ed   :  { %946 = dma.done.wait [#allocation3], 256  }
 0x4ee   :  { %947 = vsyncadd [#allocation3], 4294967040 }
 0x4ef   :  { %802 = vsyncpa [#allocation3], 1 }

</bundles_post_ra>
